<compile_context>
chip_gen: v6e
topology: v6e:2x2x1
jax: 0.10.0
libtpu: 0.0.40
codegen_flags: <defaults>
</compile_context>

<pallas_src>
import functools

import jax
import jax.numpy as jnp
from jax.experimental import pallas as pl
from jax.experimental.pallas import tpu as pltpu

LN_EPS = 1e-5


def _round_up(n, m):
    return ((n + m - 1) // m) * m


def _pwff_kernel(x_ref, w0_ref, b0_ref, w1_ref, b1_ref, g_ref, beta_ref, o_ref,
                 *, residual, layer_norm, d_valid, compute_dtype):
    x = x_ref[...]                                              # (TM, D0p) f32
    # layer 0: 1x1 conv == linear (MXU, narrow inputs / f32 accumulation)
    pre = (jnp.dot(x.astype(compute_dtype), w0_ref[...],
                   preferred_element_type=jnp.float32)
           + b0_ref[...])                                       # (TM, Hp) f32
    # tanh in the compute dtype (bf16 EUP on v6e/v7x); stays narrow into the
    # second MXU pass.
    h = jnp.tanh(pre.astype(compute_dtype))                     # (TM, Hp)
    # layer 1: linear, no activation
    y = (jnp.dot(h, w1_ref[...], preferred_element_type=jnp.float32)
         + b1_ref[...])                                         # (TM, D0p) f32
    if residual:
        y = y + x
    if layer_norm:
        # Single reduction sweep: mean = E[y], var = E[y^2] - mean^2.
        # Padded channels are exactly zero, so sums over the padded width
        # equal sums over the real width; divide by the *real* channel count.
        inv_d = jnp.float32(1.0 / d_valid)
        s1 = jnp.sum(y, axis=-1, keepdims=True)
        s2 = jnp.sum(y * y, axis=-1, keepdims=True)
        mean = s1 * inv_d
        var = s2 * inv_d - mean * mean
        y = (y - mean) * jax.lax.rsqrt(var + LN_EPS)
        y = y * g_ref[...] + beta_ref[...]          # padded gamma/beta are 0
    o_ref[...] = y.astype(o_ref.dtype)


def positionwise_feed_forward(x, params, *, residual=True, layer_norm=True,
                              tm=512, compute_dtype=jnp.bfloat16):
    """x: (B, L, D0) float32. params: dict of w0, b0, w1, b1, gamma, beta."""
    B, L, D0 = x.shape
    H = params["w0"].shape[1]
    assert params["w1"].shape == (H, D0)

    rows = B * L
    # Lane-dense channel dims (multiples of 128) and a large, MXU-friendly row
    # tile.  For tiny inputs shrink the tile so we don't pad 500+ dead rows;
    # for real workloads tm=512 keeps the grid long enough for v7x megacore.
    d0p = _round_up(D0, 128)
    hp = _round_up(H, 128)
    tm_eff = min(tm, _round_up(rows, 8))
    rows_pad = _round_up(rows, tm_eff)

    x2d = jnp.zeros((rows_pad, d0p), jnp.float32)
    x2d = x2d.at[:rows, :D0].set(x.reshape(rows, D0).astype(jnp.float32))

    # Weights zero-padded, then cast to the MXU compute dtype (halves weight
    # DMA bytes and VMEM residency when bf16).
    w0 = jnp.zeros((d0p, hp), jnp.float32).at[:D0, :H].set(params["w0"])
    w1 = jnp.zeros((hp, d0p), jnp.float32).at[:H, :D0].set(params["w1"])
    w0 = w0.astype(compute_dtype)
    w1 = w1.astype(compute_dtype)
    b0 = jnp.zeros((1, hp), jnp.float32).at[0, :H].set(params["b0"])
    b1 = jnp.zeros((1, d0p), jnp.float32).at[0, :D0].set(params["b1"])
    gamma = jnp.zeros((1, d0p), jnp.float32).at[0, :D0].set(params["gamma"])
    beta = jnp.zeros((1, d0p), jnp.float32).at[0, :D0].set(params["beta"])

    kernel = functools.partial(
        _pwff_kernel, residual=residual, layer_norm=layer_norm,
        d_valid=float(D0), compute_dtype=compute_dtype)

    # VMEM budget: double-buffered row I/O + (worst-case double-buffered)
    # weights + hidden intermediates; clamp to v7x's 64 MiB per-core VMEM.
    w_item = jnp.dtype(compute_dtype).itemsize
    est = (2 * tm_eff * d0p * 4 * 2            # x + out tiles, double-buffered
           + 2 * (d0p * hp) * w_item * 2       # W0 + W1
           + (hp + 3 * d0p) * 4 * 2            # biases / LN params
           + 3 * tm_eff * hp * 4)              # hidden intermediates headroom
    vmem_limit = int(min(max(est * 5 // 4, 32 * 1024 * 1024),
                         64 * 1024 * 1024))

    out2d = pl.pallas_call(
        kernel,
        out_shape=jax.ShapeDtypeStruct((rows_pad, d0p), jnp.float32),
        grid_spec=pltpu.PrefetchScalarGridSpec(
            num_scalar_prefetch=0,
            grid=(rows_pad // tm_eff,),
            in_specs=[
                pl.BlockSpec((tm_eff, d0p), lambda i: (i, 0)),   # x row tile
                pl.BlockSpec((d0p, hp), lambda i: (0, 0)),       # W0 (resident)
                pl.BlockSpec((1, hp), lambda i: (0, 0)),         # b0
                pl.BlockSpec((hp, d0p), lambda i: (0, 0)),       # W1 (resident)
                pl.BlockSpec((1, d0p), lambda i: (0, 0)),        # b1
                pl.BlockSpec((1, d0p), lambda i: (0, 0)),        # LN gamma
                pl.BlockSpec((1, d0p), lambda i: (0, 0)),        # LN beta
            ],
            out_specs=pl.BlockSpec((tm_eff, d0p), lambda i: (i, 0)),
        ),
        compiler_params=pltpu.CompilerParams(
            dimension_semantics=("parallel",),
            vmem_limit_bytes=vmem_limit),
    )(x2d, w0, b0, w1, b1, gamma, beta)

    return out2d[:rows, :D0].reshape(B, L, D0).astype(x.dtype)


def make_params(key, dims):
    """Deterministic parameter init. dims = [D0, H, D0].
    Conv1d(out, in, 1) weight is stored transposed as (in, out)."""
    d0, h, d_out = dims
    k0, k1, k2, k3 = jax.random.split(key, 4)
    scale0 = 1.0 / jnp.sqrt(d0)
    scale1 = 1.0 / jnp.sqrt(h)
    return {
        "w0": jax.random.uniform(k0, (d0, h), jnp.float32, -scale0, scale0),
        "b0": jax.random.uniform(k1, (h,), jnp.float32, -scale0, scale0),
        "w1": jax.random.uniform(k2, (h, d_out), jnp.float32, -scale1, scale1),
        "b1": jax.random.uniform(k3, (d_out,), jnp.float32, -scale1, scale1),
        "gamma": jnp.ones((d_out,), jnp.float32),
        "beta": jnp.zeros((d_out,), jnp.float32),
    }


def _reference(x, params, residual=True, layer_norm=True):
    """Plain-JAX reference reproducing the PyTorch forward semantics."""
    hi = jax.lax.Precision.HIGHEST
    h = jnp.tanh(jnp.einsum("bld,dh->blh", x, params["w0"], precision=hi)
                 + params["b0"])
    y = jnp.einsum("blh,hd->bld", h, params["w1"], precision=hi) + params["b1"]
    if residual:
        y = y + x
    if layer_norm:
        mean = jnp.mean(y, axis=-1, keepdims=True)
        var = jnp.mean((y - mean) ** 2, axis=-1, keepdims=True)
        y = (y - mean) / jnp.sqrt(var + LN_EPS)
        y = y * params["gamma"] + params["beta"]
    return y


# TODO(synk): nn.Dropout path not implemented (module is configured with
# dropout=None, i.e. eval-mode forward); reshape=True branch also unused.

if __name__ == "__main__":
    key = jax.random.PRNGKey(0)
    kx, kp, kx2 = jax.random.split(key, 3)

    B, L, D0, H = 2, 8, 32, 64            # dims = [32, 64, 32]
    dims = [D0, H, D0]

    x = jax.random.normal(kx, (B, L, D0), jnp.float32)
    params = make_params(kp, dims)
    ref = _reference(x, params, residual=True, layer_norm=True)

    # f32 compute path: tight correctness gate against the plain-JAX reference.
    out_f32 = positionwise_feed_forward(x, params, residual=True,
                                        layer_norm=True,
                                        compute_dtype=jnp.float32)
    out_f32 = jax.block_until_ready(out_f32)
    assert out_f32.shape == (B, L, D0)
    assert jnp.allclose(out_f32, ref, atol=2e-4, rtol=2e-4), \
        float(jnp.max(jnp.abs(out_f32 - ref)))

    # Default bf16 MXU path: relaxed tolerance (f32 accumulation + f32 LN keep
    # the error small; post-LN values are O(1)).
    out_bf16 = jax.block_until_ready(
        positionwise_feed_forward(x, params, residual=True, layer_norm=True))
    assert out_bf16.shape == (B, L, D0)
    assert jnp.allclose(out_bf16, ref, atol=1e-1, rtol=1e-1), \
        float(jnp.max(jnp.abs(out_bf16 - ref)))

    # Row count not a multiple of 8 exercises the row-padding path.
    B2, L2 = 3, 5
    x2 = jax.random.normal(kx2, (B2, L2, D0), jnp.float32)
    out2 = jax.block_until_ready(
        positionwise_feed_forward(x2, params, residual=True, layer_norm=True,
                                  compute_dtype=jnp.float32))
    ref2 = _reference(x2, params, residual=True, layer_norm=True)
    assert jnp.allclose(out2, ref2, atol=2e-4, rtol=2e-4), \
        float(jnp.max(jnp.abs(out2 - ref2)))

    print("KERNEL_OK")
</pallas_src>

<mosaic_0001>
module attributes {stable_mosaic.version = 11 : i64} {
  func.func @_pwff_kernel(%arg0: i32, %arg1: memref<16x128xf32, #tpu.memory_space<vmem>>, %arg2: memref<128x128xf32, #tpu.memory_space<vmem>>, %arg3: memref<1x128xf32, #tpu.memory_space<vmem>>, %arg4: memref<128x128xf32, #tpu.memory_space<vmem>>, %arg5: memref<1x128xf32, #tpu.memory_space<vmem>>, %arg6: memref<1x128xf32, #tpu.memory_space<vmem>>, %arg7: memref<1x128xf32, #tpu.memory_space<vmem>>, %arg8: memref<16x128xf32, #tpu.memory_space<vmem>>) attributes {dimension_semantics = [#tpu.dimension_semantics<parallel>], iteration_bounds = array<i64: 1>, scalar_prefetch = 0 : i64, scratch_operands = 0 : i64, tpu.core_type = #tpu.core_type<tc>, window_params = [{transform_indices = @transform_0, window_bounds = array<i64: 16, 128>}, {pipeline_mode = #tpu.pipeline_mode<synchronous>, transform_indices = @transform_1, window_bounds = array<i64: 128, 128>}, {pipeline_mode = #tpu.pipeline_mode<synchronous>, transform_indices = @transform_2, window_bounds = array<i64: 1, 128>}, {pipeline_mode = #tpu.pipeline_mode<synchronous>, transform_indices = @transform_3, window_bounds = array<i64: 128, 128>}, {pipeline_mode = #tpu.pipeline_mode<synchronous>, transform_indices = @transform_4, window_bounds = array<i64: 1, 128>}, {pipeline_mode = #tpu.pipeline_mode<synchronous>, transform_indices = @transform_5, window_bounds = array<i64: 1, 128>}, {pipeline_mode = #tpu.pipeline_mode<synchronous>, transform_indices = @transform_6, window_bounds = array<i64: 1, 128>}, {transform_indices = @transform_7, window_bounds = array<i64: 16, 128>}]} {
    %c0 = arith.constant 0 : index
    %c0_0 = arith.constant 0 : index
    %0 = vector.load %arg1[%c0, %c0_0] : memref<16x128xf32, #tpu.memory_space<vmem>>, vector<16x128xf32>
    %c0_1 = arith.constant 0 : index
    %c0_2 = arith.constant 0 : index
    %1 = vector.load %arg2[%c0_1, %c0_2] : memref<128x128xf32, #tpu.memory_space<vmem>>, vector<128x128xf32>
    %cst = arith.constant dense<0.000000e+00> : vector<16x128xf32>
    %2 = tpu.matmul %0, %1, %cst {dimension_numbers = #tpu.dot_dimension_numbers<[1], [0], [0], [1], [0, 0, 1, 1], [], []>} : vector<16x128xf32>, vector<128x128xf32>, vector<16x128xf32> -> vector<16x128xf32>
    %c0_3 = arith.constant 0 : index
    %c0_4 = arith.constant 0 : index
    %3 = vector.load %arg3[%c0_3, %c0_4] : memref<1x128xf32, #tpu.memory_space<vmem>>, vector<1x128xf32>
    %4 = vector.broadcast %3 : vector<1x128xf32> to vector<16x128xf32>
    %5 = arith.addf %2, %4 : vector<16x128xf32>
    %6 = math.tanh %5 : vector<16x128xf32>
    %c0_5 = arith.constant 0 : index
    %c0_6 = arith.constant 0 : index
    %7 = vector.load %arg4[%c0_5, %c0_6] : memref<128x128xf32, #tpu.memory_space<vmem>>, vector<128x128xf32>
    %cst_7 = arith.constant dense<0.000000e+00> : vector<16x128xf32>
    %8 = tpu.matmul %6, %7, %cst_7 {dimension_numbers = #tpu.dot_dimension_numbers<[1], [0], [0], [1], [0, 0, 1, 1], [], []>} : vector<16x128xf32>, vector<128x128xf32>, vector<16x128xf32> -> vector<16x128xf32>
    %c0_8 = arith.constant 0 : index
    %c0_9 = arith.constant 0 : index
    %9 = vector.load %arg5[%c0_8, %c0_9] : memref<1x128xf32, #tpu.memory_space<vmem>>, vector<1x128xf32>
    %10 = vector.broadcast %9 : vector<1x128xf32> to vector<16x128xf32>
    %11 = arith.addf %8, %10 : vector<16x128xf32>
    %12 = arith.addf %11, %0 : vector<16x128xf32>
    %cst_10 = arith.constant dense<0.000000e+00> : vector<16xf32>
    %13 = vector.multi_reduction <add>, %12, %cst_10 [1] : vector<16x128xf32> to vector<16xf32>
    %14 = vector.shape_cast %13 : vector<16xf32> to vector<16x1xf32>
    %15 = arith.mulf %12, %12 : vector<16x128xf32>
    %cst_11 = arith.constant dense<0.000000e+00> : vector<16xf32>
    %16 = vector.multi_reduction <add>, %15, %cst_11 [1] : vector<16x128xf32> to vector<16xf32>
    %17 = vector.shape_cast %16 : vector<16xf32> to vector<16x1xf32>
    %cst_12 = arith.constant 3.125000e-02 : f32
    %18 = vector.broadcast %cst_12 : f32 to vector<16x1xf32>
    %19 = arith.mulf %14, %18 : vector<16x1xf32>
    %cst_13 = arith.constant 3.125000e-02 : f32
    %20 = vector.broadcast %cst_13 : f32 to vector<16x1xf32>
    %21 = arith.mulf %17, %20 : vector<16x1xf32>
    %22 = arith.mulf %19, %19 : vector<16x1xf32>
    %23 = arith.subf %21, %22 : vector<16x1xf32>
    %24 = vector.broadcast %19 : vector<16x1xf32> to vector<16x128xf32>
    %25 = arith.subf %12, %24 : vector<16x128xf32>
    %cst_14 = arith.constant 9.99999974E-6 : f32
    %26 = vector.broadcast %cst_14 : f32 to vector<16x1xf32>
    %27 = arith.addf %23, %26 : vector<16x1xf32>
    %28 = math.rsqrt %27 : vector<16x1xf32>
    %29 = vector.broadcast %28 : vector<16x1xf32> to vector<16x128xf32>
    %30 = arith.mulf %25, %29 : vector<16x128xf32>
    %c0_15 = arith.constant 0 : index
    %c0_16 = arith.constant 0 : index
    %31 = vector.load %arg6[%c0_15, %c0_16] : memref<1x128xf32, #tpu.memory_space<vmem>>, vector<1x128xf32>
    %32 = vector.broadcast %31 : vector<1x128xf32> to vector<16x128xf32>
    %33 = arith.mulf %30, %32 : vector<16x128xf32>
    %c0_17 = arith.constant 0 : index
    %c0_18 = arith.constant 0 : index
    %34 = vector.load %arg7[%c0_17, %c0_18] : memref<1x128xf32, #tpu.memory_space<vmem>>, vector<1x128xf32>
    %35 = vector.broadcast %34 : vector<1x128xf32> to vector<16x128xf32>
    %36 = arith.addf %33, %35 : vector<16x128xf32>
    %c0_19 = arith.constant 0 : index
    %c0_20 = arith.constant 0 : index
    %37 = vector.load %arg8[%c0_19, %c0_20] : memref<16x128xf32, #tpu.memory_space<vmem>>, vector<16x128xf32>
    tpu.vector_store %arg8[%c0_19, %c0_20], %36 {strides = array<i32>} : memref<16x128xf32, #tpu.memory_space<vmem>>, vector<16x128xf32>,
    return
  }
  func.func @transform_0(%arg0: i32) -> (i32, i32) {
    %c0_i32 = arith.constant 0 : i32
    %c0_i32_0 = arith.constant 0 : i32
    return %arg0, %c0_i32 : i32, i32
  }
  func.func @transform_1(%arg0: i32) -> (i32, i32) {
    %c0_i32 = arith.constant 0 : i32
    %c0_i32_0 = arith.constant 0 : i32
    %c0_i32_1 = arith.constant 0 : i32
    return %c0_i32, %c0_i32_0 : i32, i32
  }
  func.func @transform_2(%arg0: i32) -> (i32, i32) {
    %c0_i32 = arith.constant 0 : i32
    %c0_i32_0 = arith.constant 0 : i32
    %c0_i32_1 = arith.constant 0 : i32
    return %c0_i32, %c0_i32_0 : i32, i32
  }
  func.func @transform_3(%arg0: i32) -> (i32, i32) {
    %c0_i32 = arith.constant 0 : i32
    %c0_i32_0 = arith.constant 0 : i32
    %c0_i32_1 = arith.constant 0 : i32
    return %c0_i32, %c0_i32_0 : i32, i32
  }
  func.func @transform_4(%arg0: i32) -> (i32, i32) {
    %c0_i32 = arith.constant 0 : i32
    %c0_i32_0 = arith.constant 0 : i32
    %c0_i32_1 = arith.constant 0 : i32
    return %c0_i32, %c0_i32_0 : i32, i32
  }
  func.func @transform_5(%arg0: i32) -> (i32, i32) {
    %c0_i32 = arith.constant 0 : i32
    %c0_i32_0 = arith.constant 0 : i32
    %c0_i32_1 = arith.constant 0 : i32
    return %c0_i32, %c0_i32_0 : i32, i32
  }
  func.func @transform_6(%arg0: i32) -> (i32, i32) {
    %c0_i32 = arith.constant 0 : i32
    %c0_i32_0 = arith.constant 0 : i32
    %c0_i32_1 = arith.constant 0 : i32
    return %c0_i32, %c0_i32_0 : i32, i32
  }
  func.func @transform_7(%arg0: i32) -> (i32, i32) {
    %c0_i32 = arith.constant 0 : i32
    %c0_i32_0 = arith.constant 0 : i32
    return %arg0, %c0_i32 : i32, i32
  }
}

</mosaic_0001>

<bundles_post_ra>
// kernel: tpu_custom_call.1
= control target key start
LH: loop header
LB: loop body
LE: loop exit
PB: predicated region body
PF: predicated region fallthrough
CT: control target
= control target key end

     0   :  { %12 = vsyncpa [#allocation3], 0  ;;  %s630_s0 = inlined_call_operand.hbm [shape: f32[16,128], index: 0, kind: input, shape index: {}]   ;;  %s631_s1 = inlined_call_operand.hbm [shape: f32[128,128], index: 1, kind: input, shape index: {}]   ;;  %s632_s2 = inlined_call_operand.vmem [shape: f32[1,128], index: 2, kind: input, shape index: {}]   ;;  %s633_s3 = inlined_call_operand.hbm [shape: f32[128,128], index: 3, kind: input, shape index: {}]   ;;  %s634_s4 = inlined_call_operand.vmem [shape: f32[1,128], index: 4, kind: input, shape index: {}]   ;;  %s635_s5 = inlined_call_operand.vmem [shape: f32[1,128], index: 5, kind: input, shape index: {}]   ;;  %s636_s6 = inlined_call_operand.vmem [shape: f32[1,128], index: 6, kind: input, shape index: {}]   ;;  %s637_s7 = inlined_call_operand.hbm [shape: f32[16,128], index: 7, kind: output, shape index: {}]  }
   0x1   :  { %13 = vsyncpa [#allocation6], 0 }
   0x2   :  { %14 = vsyncpa [#allocation4], 0  ;;  %s544_s24 = smov [#allocation5]   ;;  %s545_s26 = smov [#allocation2]  }
   0x3   :  { %s32_s25 = sshll.u32 %s544_s24, 4  ;;  %s20_s27 = sshll.u32 %s545_s26, 4  ;;  %s33_s25 = int_to_ptr.vmem [resolvable:$true] %s32_s25  ;;  %s21_s27 = int_to_ptr.vmem [resolvable:$true] %s20_s27 }
   0x4   :  { %s466_s28 = scalar_lea.vmem %s33_s25, 2048  ;;  %p471_p1 = scmp.lt.s32.totalorder %s33_s25, %s33_s25 }
   0x5   :  { %p467_p0 = scmp.ne.s32.totalorder %s33_s25, %s466_s28  ;;  %p472_p2 = scmp.lt.s32.totalorder %s466_s28, %s466_s28 }
   0x7   :  { %p473_p3 = por %p472_p2, %p471_p1 }
   0x9   :  { %p474_p4 = pnand %p473_p3, %p467_p0 }
   0xb   :  { %477 = shalt.err (!%p474_p4)
}
   0xc   :  { %s546_s29 = smov 128   ;;  %s547_s30 = smov 8  }
   0xd   :  { %38 = dma.hbm_to_vmem [thread:$0]  %s631_s1, 2048, %s33_s25, [#allocation6], %s546_s29, %s546_s29, %s547_s30  }
   0xe   :  { %s486_s10 = scalar_lea.vmem %s21_s27, 256  ;;  %p491_p6 = scmp.lt.s32.totalorder %s21_s27, %s21_s27 }
   0xf   :  { %p487_p5 = scmp.ne.s32.totalorder %s21_s27, %s486_s10  ;;  %p492_p7 = scmp.lt.s32.totalorder %s486_s10, %s486_s10 }
  0x11   :  { %p493_p8 = por %p492_p7, %p491_p6 }
  0x13   :  { %p494_p9 = pnand %p493_p8, %p487_p5 }
  0x15   :  { %497 = shalt.err (!%p494_p9)
}
  0x16   :  { %26 = dma.hbm_to_vmem [thread:$0]  %s630_s0, 256, %s21_s27, [#allocation3], %s546_s29, %s546_s29, %s547_s30  }
  0x17   :  { %s548_s13 = smov [#allocation7]  }
  0x18   :  { %s46_s14 = sshll.u32 %s548_s13, 4  ;;  %s47_s14 = int_to_ptr.vmem [resolvable:$true] %s46_s14 }
  0x19   :  { %s506_s15 = scalar_lea.vmem %s47_s14, 2048  ;;  %p511_p11 = scmp.lt.s32.totalorder %s47_s14, %s47_s14 }
  0x1a   :  { %p507_p10 = scmp.ne.s32.totalorder %s47_s14, %s506_s15  ;;  %p512_p12 = scmp.lt.s32.totalorder %s506_s15, %s506_s15 }
  0x1c   :  { %p513_p13 = por %p512_p12, %p511_p11 }
  0x1e   :  { %p514_p0 = pnand %p513_p13, %p507_p10 }
  0x20   :  { %517 = shalt.err (!%p514_p0)
}
  0x21   :  { %52 = dma.hbm_to_vmem [thread:$0]  %s633_s3, 2048, %s47_s14, [#allocation6], %s546_s29, %s546_s29, %s547_s30  }
  0x22   :  { %538 = dma.done.wait [#allocation3], 256  }
  0x23   :  { %539 = vsyncadd [#allocation3], 4294967040 }
  0x24   :  { %540 = dma.done.wait [#allocation6], 4096  }
  0x25   :  { %541 = vsyncadd [#allocation6], 4294963200  ;;  %v85_v0 = vld [vmem:[#allocation5 + $0x78] sm:$0xff]  ;;  %v84_v1 = vld [vmem:[#allocation5 + $0x70] sm:$0xff]  ;;  %s549_s21 = smov [#allocation8]  }
  0x26   :  { %374 = vmatprep.subr.mxu0 %v85_v0  ;;  %v83_v2 = vld [vmem:[#allocation5 + $0x68] sm:$0xff]  ;;  %v82_v3 = vld [vmem:[#allocation5 + $0x60] sm:$0xff]  ;;  %v608_v4 = vld [vmem:[#allocation2] sm:$0xff]  ;;  %s321_s22 = sshll.u32 %s549_s21, 4  ;;  %s322_s22 = int_to_ptr.vmem [resolvable:$true] %s321_s22 }
  0x27   :  { %375 = vmatpush3.msra.mxu0 %v85_v0  ;;  %v81_v5 = vld [vmem:[#allocation5 + $0x58] sm:$0xff]  ;;  %406 = vmatprep.mubr.f32.mxu0 %v608_v4  ;;  %v184_v7 = vld [vmem:[#allocation7 + $0x70] sm:$0xff]  ;;  %v183_v9 = vld [vmem:[#allocation7 + $0x68] sm:$0xff]  ;;  %s518_s23 = scalar_lea.vmem %s322_s22, 256  ;;  %p523_p2 = scmp.lt.s32.totalorder %s322_s22, %s322_s22 }
  0x28   :  { %376 = vmatprep.subr.mxu0 %v84_v1  ;;  %v185_v6 = vld [vmem:[#allocation7 + $0x78] sm:$0xff]  ;;  %v80_v8 = vld [vmem:[#allocation5 + $0x50] sm:$0xff]  ;;  %v79_v10 = vld [vmem:[#allocation5 + $0x48] sm:$0xff]  ;;  %p519_p1 = scmp.ne.s32.totalorder %s322_s22, %s518_s23  ;;  %p524_p3 = scmp.lt.s32.totalorder %s518_s23, %s518_s23 }
  0x29   :  { %377 = vmatpush3.msra.mxu0 %v84_v1  ;;  %409 = vmatprep.subr.mxu1 %v185_v6  ;;  %v182_v11 = vld [vmem:[#allocation7 + $0x60] sm:$0xff]  ;;  %v181_v13 = vld [vmem:[#allocation7 + $0x58] sm:$0xff]  ;;  %v180_v15 = vld [vmem:[#allocation7 + $0x50] sm:$0xff] }
  0x2a   :  { %378 = vmatprep.subr.mxu0 %v83_v2  ;;  %410 = vmatpush3.msra.mxu1 %v185_v6  ;;  %v78_v12 = vld [vmem:[#allocation5 + $0x40] sm:$0xff]  ;;  %v77_v14 = vld [vmem:[#allocation5 + $0x38] sm:$0xff]  ;;  %v76_v16 = vld [vmem:[#allocation5 + $0x30] sm:$0xff]  ;;  %p525_p4 = por %p524_p3, %p523_p2 }
  0x2b   :  { %379 = vmatpush3.msra.mxu0 %v83_v2  ;;  %411 = vmatprep.subr.mxu1 %v184_v7  ;;  %v75_v17 = vld [vmem:[#allocation5 + $0x28] sm:$0xff]  ;;  %v74_v18 = vld [vmem:[#allocation5 + $0x20] sm:$0xff]  ;;  %v73_v19 = vld [vmem:[#allocation5 + $0x18] sm:$0xff] }
  0x2c   :  { %380 = vmatprep.subr.mxu0 %v82_v3  ;;  %412 = vmatpush3.msra.mxu1 %v184_v7  ;;  %v72_v20 = vld [vmem:[#allocation5 + $0x10] sm:$0xff]  ;;  %v71_v21 = vld [vmem:[#allocation5 + $0x8] sm:$0xff]  ;;  %v70_v22 = vld [vmem:[#allocation5] sm:$0xff]  ;;  %p526_p5 = pnand %p525_p4, %p519_p1 }
  0x2d   :  { %381 = vmatpush3.msra.mxu0 %v82_v3  ;;  %413 = vmatprep.subr.mxu1 %v183_v9  ;;  %v69_v23 = vld [vmem:[#allocation2 + $0x8] sm:$0xff]  ;;  %v179_v24 = vld [vmem:[#allocation7 + $0x48] sm:$0xff]  ;;  %v178_v25 = vld [vmem:[#allocation7 + $0x40] sm:$0xff] }
  0x2e   :  { %382 = vmatprep.subr.mxu0 %v81_v5  ;;  %414 = vmatpush3.msra.mxu1 %v183_v9  ;;  %v177_v26 = vld [vmem:[#allocation7 + $0x38] sm:$0xff]  ;;  %v176_v27 = vld [vmem:[#allocation7 + $0x30] sm:$0xff]  ;;  %v175_v28 = vld [vmem:[#allocation7 + $0x28] sm:$0xff] }
  0x2f   :  { %383 = vmatpush3.msra.mxu0 %v81_v5  ;;  %415 = vmatprep.subr.mxu1 %v182_v11  ;;  %v174_v29 = vld [vmem:[#allocation7 + $0x20] sm:$0xff]  ;;  %v173_v30 = vld [vmem:[#allocation7 + $0x18] sm:$0xff]  ;;  %v172_v31 = vld [vmem:[#allocation7 + $0x10] sm:$0xff] }
  0x30   :  { %384 = vmatprep.subr.mxu0 %v80_v8  ;;  %416 = vmatpush3.msra.mxu1 %v182_v11  ;;  %v171_v32 = vld [vmem:[#allocation7 + $0x8] sm:$0xff]  ;;  %v170_v33 = vld [vmem:[#allocation7] sm:$0xff]  ;;  %v334_v34 = vld [vmem:[%s632_s2] ss:$0 sm:$0xff] }
  0x31   :  { %385 = vmatpush3.msra.mxu0 %v80_v8  ;;  %417 = vmatprep.subr.mxu1 %v181_v13  ;;  %v335_v42 = vld [vmem:[%s634_s4] ss:$0 sm:$0xff] }
  0x32   :  { %386 = vmatprep.subr.mxu0 %v79_v10  ;;  %418 = vmatpush3.msra.mxu1 %v181_v13  ;;  %v336_v2 = vld [vmem:[%s635_s5] ss:$0 sm:$0xff] }
  0x33   :  { %387 = vmatpush3.msra.mxu0 %v79_v10  ;;  %419 = vmatprep.subr.mxu1 %v180_v15 }
  0x34   :  { %388 = vmatprep.subr.mxu0 %v78_v12  ;;  %420 = vmatpush3.msra.mxu1 %v180_v15 }
  0x35   :  { %389 = vmatpush3.msra.mxu0 %v78_v12  ;;  %421 = vmatprep.subr.mxu1 %v179_v24 }
  0x36   :  { %390 = vmatprep.subr.mxu0 %v77_v14  ;;  %422 = vmatpush3.msra.mxu1 %v179_v24 }
  0x37   :  { %391 = vmatpush3.msra.mxu0 %v77_v14  ;;  %423 = vmatprep.subr.mxu1 %v178_v25 }
  0x38   :  { %392 = vmatprep.subr.mxu0 %v76_v16  ;;  %424 = vmatpush3.msra.mxu1 %v178_v25 }
  0x39   :  { %393 = vmatpush3.msra.mxu0 %v76_v16  ;;  %425 = vmatprep.subr.mxu1 %v177_v26 }
  0x3a   :  { %394 = vmatprep.subr.mxu0 %v75_v17  ;;  %426 = vmatpush3.msra.mxu1 %v177_v26 }
  0x3b   :  { %395 = vmatpush3.msra.mxu0 %v75_v17  ;;  %427 = vmatprep.subr.mxu1 %v176_v27 }
  0x3c   :  { %396 = vmatprep.subr.mxu0 %v74_v18  ;;  %428 = vmatpush3.msra.mxu1 %v176_v27 }
  0x3d   :  { %397 = vmatpush3.msra.mxu0 %v74_v18  ;;  %429 = vmatprep.subr.mxu1 %v175_v28 }
  0x3e   :  { %398 = vmatprep.subr.mxu0 %v73_v19  ;;  %430 = vmatpush3.msra.mxu1 %v175_v28 }
  0x3f   :  { %399 = vmatpush3.msra.mxu0 %v73_v19  ;;  %431 = vmatprep.subr.mxu1 %v174_v29 }
  0x40   :  { %400 = vmatprep.subr.mxu0 %v72_v20  ;;  %432 = vmatpush3.msra.mxu1 %v174_v29 }
  0x41   :  { %401 = vmatpush3.msra.mxu0 %v72_v20  ;;  %433 = vmatprep.subr.mxu1 %v173_v30 }
  0x42   :  { %402 = vmatprep.subr.mxu0 %v71_v21  ;;  %434 = vmatpush3.msra.mxu1 %v173_v30 }
  0x43   :  { %403 = vmatpush3.msra.mxu0 %v71_v21  ;;  %435 = vmatprep.subr.mxu1 %v172_v31 }
  0x44   :  { %404 = vmatprep.subr.mxu0 %v70_v22  ;;  %436 = vmatpush3.msra.mxu1 %v172_v31 }
  0x45   :  { %405 = vmatpush3.msra.mxu0 %v70_v22  ;;  %437 = vmatprep.subr.mxu1 %v171_v32 }
  0x46   :  { %407 = vmatmul.mubr.f32.vlgmr.msra.gmra.mxu0 %v69_v23  ;;  %438 = vmatpush3.msra.mxu1 %v171_v32 }
  0x47   :  { %439 = vmatprep.subr.mxu1 %v170_v33 }
  0x48   :  { %440 = vmatpush3.msra.mxu1 %v170_v33 }
 0x106   :  { %v408_v35 = vpop.f32.mrf.mxu0 }
 0x107   :  { %v165_v36 = vadd.f32 %v408_v35, %v334_v34 }
 0x108   :  { %v159_v37 = vpop.f32.mrf.mxu0 }
 0x109   :  { %v160_v38 = vadd.f32 %v334_v34, %v159_v37 }
 0x10b   :  { %450 = vtanh.f32 %v160_v38 }
 0x10c   :  { %452 = vtanh.f32 %v165_v36 }
 0x118   :  { %v451_v39 = vpop.eup %450 }
 0x119   :  { %v453_v40 = vpop.eup %452  ;;  %441 = vmatprep.mubr.f32.mxu1 %v451_v39 }
 0x11a   :  { %442 = vmatmul.mubr.f32.vlgmr.msra.gmra.mxu1 %v453_v40 }
 0x1da   :  { %v443_v41 = vpop.f32.mrf.mxu1 }
 0x1db   :  { %v265_v44 = vadd.f32 %v443_v41, %v335_v42 }
 0x1dc   :  { %v259_v43 = vpop.f32.mrf.mxu1 }
 0x1dd   :  { %v260_v45 = vadd.f32 %v335_v42, %v259_v43  ;;  %v269_v47 = vadd.f32 %v265_v44, %v69_v23 }
 0x1df   :  { %v268_v46 = vadd.f32 %v260_v45, %v608_v4  ;;  %v275_v49 = vmul.f32 %v269_v47, %v269_v47  ;;  %v337_v4 = vld [vmem:[%s636_s6] ss:$0 sm:$0xff] }
 0x1e1   :  { %270 = vadd.xlane.f32.xlu0 %v268_v46  ;;  %v274_v48 = vmul.f32 %v268_v46, %v268_v46 }
 0x1e3   :  { %276 = vadd.xlane.f32.xlu1 %v274_v48 }
 0x1e5   :  { %272 = vadd.xlane.f32.xlu0 %v269_v47 }
 0x1e7   :  { %278 = vadd.xlane.f32.xlu1 %v275_v49 }
 0x26a   :  { %v271_v50 = vpop.xlane.xlu0 %270 }
 0x26b   :  { %v280_v51 = vmul.f32 0.03125, %v271_v50 }
 0x26c   :  { %v277_v52 = vpop.xlane.xlu1 %276 }
 0x26d   :  { %v284_v53 = vmul.f32 %v280_v51, %v280_v51  ;;  %v282_v54 = vmul.f32 0.03125, %v277_v52  ;;  %v288_v0 = vsub.f32 %v268_v46, %v280_v51 }
 0x26e   :  { %v273_v55 = vpop.xlane.xlu0 %272 }
 0x26f   :  { %v286_v56 = vsub.f32 %v282_v54, %v284_v53  ;;  %v281_v57 = vmul.f32 0.03125, %v273_v55 }
 0x270   :  { %v279_v58 = vpop.xlane.xlu1 %278 }
 0x271   :  { %v290_v59 = vadd.f32 1e-05, %v286_v56  ;;  %v285_v60 = vmul.f32 %v281_v57, %v281_v57  ;;  %v283_v61 = vmul.f32 0.03125, %v279_v58  ;;  %v289_v5 = vsub.f32 %v269_v47, %v281_v57 }
 0x273   :  { %454 = vrsqrt.f32 %v290_v59  ;;  %v287_v62 = vsub.f32 %v283_v61, %v285_v60 }
 0x275   :  { %v291_v63 = vadd.f32 1e-05, %v287_v62 }
 0x277   :  { %456 = vrsqrt.f32 %v291_v63 }
 0x280   :  { %v455_v1 = vpop.eup %454 }
 0x281   :  { %v294_v3 = vmul.f32 %v455_v1, %v288_v0 }
 0x283   :  { %v303_v6 = vmul.f32 %v336_v2, %v294_v3 }
 0x284   :  { %v457_v7 = vpop.eup %456 }
 0x285   :  { %v295_v8 = vmul.f32 %v457_v7, %v289_v5  ;;  %v312_v9 = vadd.f32 %v337_v4, %v303_v6 }
 0x287   :  { %v304_v10 = vmul.f32 %v336_v2, %v295_v8  ;;  %314 = vst [vmem:[#allocation8] sm:$0xff] %v312_v9 }
 0x289   :  { %v313_v11 = vadd.f32 %v337_v4, %v304_v10 }
 0x28b   :  { %315 = vst [vmem:[#allocation8 + $0x8] sm:$0xff] %v313_v11 }
 0x28c   :  { %529 = shalt.err (!%p526_p5)
}
 0x28d   :  { %327 = dma.vmem_to_hbm [thread:$0]  %s322_s22, 256, %s637_s7, [#allocation4], %s546_s29, %s546_s29, %s547_s30  }
 0x28e   :  { %542 = dma.done.wait [#allocation4], 256  }
 0x28f   :  { %543 = vsyncadd [#allocation4], 4294967040 }
 0x290   :  { %331 = vsyncpa [#allocation3], 1 }
 0x291   :  { %332 = vsyncpa [#allocation6], 1 }
 0x292   :  { %333 = vsyncpa [#allocation4], 1 }

</bundles_post_ra>
